<compile_context>
chip_gen: v7x
topology: tpu7x:2x2x1
jax: 0.10.0
libtpu: 0.0.40
codegen_flags: <defaults>
</compile_context>

<pallas_src>
import functools
import math

import jax
import jax.numpy as jnp
import numpy as np
from jax.experimental import pallas as pl
from jax.experimental.pallas import tpu as pltpu

_LANE = 128
_SUBLANE = 8
_HALF_LOG_2PI = 0.5 * math.log(2.0 * math.pi)


def _round_up(n, m):
    return ((n + m - 1) // m) * m


def _pad2d(a, rows, cols):
    r, c = a.shape
    if r == rows and c == cols:
        return a
    return jnp.pad(a, ((0, rows - r), (0, cols - c)))


# ---------------------------------------------------------------------------
# Kernel bodies
# ---------------------------------------------------------------------------
def _mlp_heads(x, w1, b1, w2, b2, w3, b3, m_pad):
    """Flatten -> Linear -> ReLU -> Linear -> ReLU -> Linear, with the last
    layer pre-concatenated as [mean head | log-std head], each head padded to
    m_pad lanes so the split below is 128-aligned (free, no cross-lane move).

    Weights / x arrive as bf16 (half the DMA bytes); every dot accumulates in
    f32 via preferred_element_type; activations stay f32 for accuracy."""
    f32 = jnp.float32
    h1 = jnp.maximum(jnp.dot(x, w1, preferred_element_type=f32) + b1, 0.0)
    h2 = jnp.maximum(
        jnp.dot(h1, w2.astype(f32), preferred_element_type=f32) + b2, 0.0)
    out = jnp.dot(h2, w3.astype(f32), preferred_element_type=f32) + b3
    return out[:, :m_pad], out[:, m_pad:]            # mean, log-std


def _encoder_fwd_kernel(x_ref, w1_ref, b1_ref, w2_ref, b2_ref, w3_ref, b3_ref,
                        out_ref, *, m_pad):
    mean, logstd = _mlp_heads(x_ref[...], w1_ref[...], b1_ref[...],
                              w2_ref[...], b2_ref[...],
                              w3_ref[...], b3_ref[...], m_pad)
    # Single packed lane-dense output block: [:, :m_pad]=mean, [:, m_pad:]=scale.
    out_ref[:, :m_pad] = mean.astype(out_ref.dtype)
    out_ref[:, m_pad:] = jnp.exp(logstd).astype(out_ref.dtype)     # EUP slot


def _encoder_logprob_kernel(x_ref, z_ref, w1_ref, b1_ref, w2_ref, b2_ref,
                            w3_ref, b3_ref, lp_ref, *, m_pad, m_valid):
    """Fused forward + Independent(Normal(mean, exp(std)), 1).log_prob(z).

    Padded latent columns have mean = 0, log-std = 0, z = 0 exactly (padded
    w3 / b3 / z entries are zeros by construction), so each contributes exactly
    -0.5*log(2*pi); the closed-form correction below removes them with no
    iota/where mask on the VPU path."""
    mean, logstd = _mlp_heads(x_ref[...], w1_ref[...], b1_ref[...],
                              w2_ref[...], b2_ref[...],
                              w3_ref[...], b3_ref[...], m_pad)
    zz = (z_ref[...].astype(jnp.float32) - mean) * jnp.exp(-logstd)  # 1/scale on EUP
    elem = -0.5 * zz * zz - logstd - _HALF_LOG_2PI                   # (TB, m_pad)
    row_lp = (jnp.sum(elem, axis=-1, keepdims=True)
              + (m_pad - m_valid) * _HALF_LOG_2PI)                   # (TB, 1)
    # Lane-dense store (broadcast across 128 lanes) instead of a masked (TB,1) store.
    lp_ref[...] = jnp.broadcast_to(row_lp, lp_ref.shape).astype(lp_ref.dtype)


# ---------------------------------------------------------------------------
# GaussianEncoder wrapper
# ---------------------------------------------------------------------------
class GaussianEncoderPallas:
    """forward(x) -> (mean, scale): parameters of
    td.Independent(td.Normal(loc=mean, scale=exp(std)), 1) from the torch code.
    log_prob(x, z) -> fused Independent log-prob of z under that distribution."""

    def __init__(self, params, latent_dim, *, batch_tile=512):
        w1, b1, w2, b2, w3, b3 = (jnp.asarray(p) for p in params)
        # torch nn.Linear biases are 1-D; accept both 1-D and (1, F).
        b1, b2, b3 = (b if b.ndim == 2 else b[None, :] for b in (b1, b2, b3))

        D_in, H = w1.shape
        M = latent_dim
        assert w3.shape[1] == 2 * M, "last layer must output 2*M features"

        # torch.chunk(.., 2, dim=-1): split the last layer into two heads.
        w3m, w3s = w3[:, :M], w3[:, M:]
        b3m, b3s = b3[:, :M], b3[:, M:]

        Dp = _round_up(D_in, _LANE)
        Hp = _round_up(H, _LANE)
        Mp = _round_up(M, _LANE)
        self.D_in, self.M = D_in, M
        self.D_pad, self.H_pad, self.M_pad = Dp, Hp, Mp
        self.batch_tile = max(_SUBLANE, _round_up(int(batch_tile), _SUBLANE))

        bf16, f32 = jnp.bfloat16, jnp.float32
        # bf16 weights: half the HBM->VMEM DMA bytes (accumulation stays f32 in
        # the kernel). Padded columns/rows are exact zeros; the log_prob padding
        # correction relies on that invariant.
        self.w1 = _pad2d(w1.astype(bf16), Dp, Hp)
        self.w2 = _pad2d(w2.astype(bf16), Hp, Hp)
        # Fused head matmul: [mean head | log-std head], each padded to Mp so
        # the in-kernel split point is a multiple of 128.
        self.w3 = jnp.concatenate(
            [_pad2d(w3m.astype(bf16), Hp, Mp), _pad2d(w3s.astype(bf16), Hp, Mp)],
            axis=1)
        self.b1 = _pad2d(b1.astype(f32), 1, Hp)
        self.b2 = _pad2d(b2.astype(f32), 1, Hp)
        self.b3 = jnp.concatenate(
            [_pad2d(b3m.astype(f32), 1, Mp), _pad2d(b3s.astype(f32), 1, Mp)],
            axis=1)
        self._weights = (self.w1, self.b1, self.w2, self.b2, self.w3, self.b3)

        # jit: the pad/astype of x and the output slices fuse with the
        # pallas_call instead of being separate eager HBM round trips.
        self._forward_jit = jax.jit(self._forward_impl)
        self._log_prob_jit = jax.jit(self._log_prob_impl)

    # ---- shared plumbing ---------------------------------------------------
    def _tiles(self, B):
        Bp8 = _round_up(B, _SUBLANE)
        TB = min(self.batch_tile, Bp8)
        # v7x has 2 TensorCores: keep >= 2 grid steps when the batch allows it
        # so the "parallel" batch axis actually shards. Harmless on v5e/v6e.
        while TB > _SUBLANE and pl.cdiv(Bp8, TB) < 2:
            TB = _round_up(TB // 2, _SUBLANE)
        Bp = _round_up(B, TB)
        return TB, Bp, Bp // TB

    def _prep_x(self, x, Bp):
        B = x.shape[0]
        x2 = x.reshape(B, -1).astype(jnp.bfloat16)
        assert x2.shape[1] == self.D_in, "flattened feature dim mismatch"
        if B != Bp or self.D_in != self.D_pad:
            x2 = jnp.pad(x2, ((0, Bp - B), (0, self.D_pad - self.D_in)))
        return x2

    def _weight_specs(self):
        # Constant index_map: weights/biases are DMA'd once and stay resident
        # in VMEM across all batch tiles.
        # TODO(synk): for very large H/D_in, add pipeline_mode=pl.Buffered(1)
        # here to single-buffer the constant weights and free VMEM on v7x.
        return [pl.BlockSpec(w.shape, lambda i: (0, 0)) for w in self._weights]

    def _compiler_params(self, stream_in_bytes, stream_out_bytes):
        weight_bytes = sum(int(np.prod(w.shape)) * w.dtype.itemsize
                           for w in self._weights)
        # resident weights (up to double-buffered) + double-buffered streaming
        # tiles + headroom for Mosaic internal scratch / temporaries.
        need = 2 * weight_bytes + 2 * (stream_in_bytes + stream_out_bytes) + (8 << 20)
        vmem = int(min(max(need, 16 << 20), 48 << 20))
        return pltpu.CompilerParams(
            dimension_semantics=("parallel",),      # megacore batch sharding
            vmem_limit_bytes=vmem)

    # ---- forward: Normal(mean, scale) parameters -----------------------------
    def _forward_impl(self, x, w1, b1, w2, b2, w3, b3):
        B = x.shape[0]
        TB, Bp, grid = self._tiles(B)
        xp = self._prep_x(x, Bp)
        Mp = self.M_pad
        out = pl.pallas_call(
            functools.partial(_encoder_fwd_kernel, m_pad=Mp),
            out_shape=jax.ShapeDtypeStruct((Bp, 2 * Mp), jnp.float32),
            grid_spec=pltpu.PrefetchScalarGridSpec(
                num_scalar_prefetch=0,
                grid=(grid,),
                in_specs=[pl.BlockSpec((TB, self.D_pad), lambda i: (i, 0))]
                         + self._weight_specs(),
                out_specs=pl.BlockSpec((TB, 2 * Mp), lambda i: (i, 0))),
            compiler_params=self._compiler_params(
                stream_in_bytes=TB * self.D_pad * 2,
                stream_out_bytes=TB * 2 * Mp * 4),
        )(xp, w1, b1, w2, b2, w3, b3)
        mean = out[:B, :self.M]
        scale = out[:B, Mp:Mp + self.M]
        return mean, scale

    def forward(self, x):
        return self._forward_jit(x, *self._weights)

    __call__ = forward

    # ---- fused forward + Independent(Normal, 1).log_prob(z) ------------------
    def _log_prob_impl(self, x, z, w1, b1, w2, b2, w3, b3):
        B = x.shape[0]
        assert z.shape == (B, self.M)
        TB, Bp, grid = self._tiles(B)
        xp = self._prep_x(x, Bp)
        zp = _pad2d(z.astype(jnp.bfloat16), Bp, self.M_pad)
        kernel = functools.partial(_encoder_logprob_kernel,
                                   m_pad=self.M_pad, m_valid=self.M)
        lp = pl.pallas_call(
            kernel,
            out_shape=jax.ShapeDtypeStruct((Bp, _LANE), jnp.float32),
            grid_spec=pltpu.PrefetchScalarGridSpec(
                num_scalar_prefetch=0,
                grid=(grid,),
                in_specs=[pl.BlockSpec((TB, self.D_pad), lambda i: (i, 0)),
                          pl.BlockSpec((TB, self.M_pad), lambda i: (i, 0))]
                         + self._weight_specs(),
                out_specs=pl.BlockSpec((TB, _LANE), lambda i: (i, 0))),
            compiler_params=self._compiler_params(
                stream_in_bytes=TB * (self.D_pad + self.M_pad) * 2,
                stream_out_bytes=TB * _LANE * 4),
        )(xp, zp, w1, b1, w2, b2, w3, b3)
        return lp[:B, 0]                 # (B,) == Independent(Normal, 1).log_prob

    def log_prob(self, x, z):
        return self._log_prob_jit(x, z, *self._weights)


def init_encoder_params(key, D_in, H, M):
    """Deterministic init matching the shapes of the project's MLP encoder
    (Flatten -> Linear(D_in,H) -> ReLU -> Linear(H,H) -> ReLU -> Linear(H,2M))."""
    ks = jax.random.split(key, 6)

    def lin(kw, kb, fan_in, fan_out):
        lim = 1.0 / math.sqrt(fan_in)
        w = jax.random.uniform(kw, (fan_in, fan_out), jnp.float32, -lim, lim)
        b = jax.random.uniform(kb, (1, fan_out), jnp.float32, -lim, lim)
        return w, b

    w1, b1 = lin(ks[0], ks[1], D_in, H)
    w2, b2 = lin(ks[2], ks[3], H, H)
    w3, b3 = lin(ks[4], ks[5], H, 2 * M)
    return (w1, b1, w2, b2, w3, b3)


if __name__ == "__main__":
    key = jax.random.PRNGKey(0)
    k_params, k_x, k_z = jax.random.split(key, 3)

    # Small shapes: x is (batch, feature_dim1, feature_dim2), hidden=32, M=8.
    B, F1, F2 = 2, 16, 16
    H, M = 32, 8
    D_in = F1 * F2

    params = init_encoder_params(k_params, D_in, H, M)
    enc = GaussianEncoderPallas(params, latent_dim=M)

    x = jax.random.normal(k_x, (B, F1, F2), jnp.float32)
    z = jax.random.normal(k_z, (B, M), jnp.float32)

    mean, scale = enc.forward(x)
    mean = jax.block_until_ready(mean)
    scale = jax.block_until_ready(scale)

    lp = enc.log_prob(x, z)
    lp = jax.block_until_ready(lp)

    # float64 numpy reference of the torch module, fed the same bf16-rounded
    # weights / inputs the kernel consumes (so only accumulation error remains).
    def bf16(a):
        return np.asarray(
            jnp.asarray(a).astype(jnp.bfloat16).astype(jnp.float32), np.float64)

    w1, b1, w2, b2, w3, b3 = params
    w1d, w2d, w3d = bf16(w1), bf16(w2), bf16(w3)
    b1d, b2d, b3d = (np.asarray(b, np.float64) for b in (b1, b2, b3))
    xd = bf16(np.asarray(x, np.float64).reshape(B, -1))
    zd = bf16(z)

    h1 = np.maximum(xd @ w1d + b1d, 0.0)
    h2 = np.maximum(h1 @ w2d + b2d, 0.0)
    out = h2 @ w3d + b3d
    ref_mean, ref_logstd = out[:, :M], out[:, M:]
    ref_scale = np.exp(ref_logstd)
    ref_lp = np.sum(
        -0.5 * ((zd - ref_mean) / ref_scale) ** 2 - ref_logstd
        - 0.5 * np.log(2.0 * np.pi), axis=-1)

    assert np.allclose(np.asarray(mean, np.float64), ref_mean,
                       rtol=2e-3, atol=2e-3), "mean mismatch"
    assert np.allclose(np.asarray(scale, np.float64), ref_scale,
                       rtol=2e-3, atol=2e-3), "scale mismatch"
    assert np.allclose(np.asarray(lp, np.float64), ref_lp,
                       rtol=2e-3, atol=2e-2), "log_prob mismatch"

    print("KERNEL_OK")
</pallas_src>

<mosaic_0001>
module attributes {stable_mosaic.version = 11 : i64} {
  func.func @_encoder_fwd_kernel(%arg0: i32, %arg1: memref<8x256xbf16, #tpu.memory_space<vmem>>, %arg2: memref<256x128xbf16, #tpu.memory_space<vmem>>, %arg3: memref<1x128xf32, #tpu.memory_space<vmem>>, %arg4: memref<128x128xbf16, #tpu.memory_space<vmem>>, %arg5: memref<1x128xf32, #tpu.memory_space<vmem>>, %arg6: memref<128x256xbf16, #tpu.memory_space<vmem>>, %arg7: memref<1x256xf32, #tpu.memory_space<vmem>>, %arg8: memref<8x256xf32, #tpu.memory_space<vmem>>) attributes {dimension_semantics = [#tpu.dimension_semantics<parallel>], iteration_bounds = array<i64: 1>, scalar_prefetch = 0 : i64, scratch_operands = 0 : i64, tpu.core_type = #tpu.core_type<tc>, window_params = [{transform_indices = @transform_0, window_bounds = array<i64: 8, 256>}, {pipeline_mode = #tpu.pipeline_mode<synchronous>, transform_indices = @transform_1, window_bounds = array<i64: 256, 128>}, {pipeline_mode = #tpu.pipeline_mode<synchronous>, transform_indices = @transform_2, window_bounds = array<i64: 1, 128>}, {pipeline_mode = #tpu.pipeline_mode<synchronous>, transform_indices = @transform_3, window_bounds = array<i64: 128, 128>}, {pipeline_mode = #tpu.pipeline_mode<synchronous>, transform_indices = @transform_4, window_bounds = array<i64: 1, 128>}, {pipeline_mode = #tpu.pipeline_mode<synchronous>, transform_indices = @transform_5, window_bounds = array<i64: 128, 256>}, {pipeline_mode = #tpu.pipeline_mode<synchronous>, transform_indices = @transform_6, window_bounds = array<i64: 1, 256>}, {transform_indices = @transform_7, window_bounds = array<i64: 8, 256>}]} {
    %c0 = arith.constant 0 : index
    %c0_0 = arith.constant 0 : index
    %0 = vector.load %arg1[%c0, %c0_0] : memref<8x256xbf16, #tpu.memory_space<vmem>>, vector<8x256xbf16>
    %c0_1 = arith.constant 0 : index
    %c0_2 = arith.constant 0 : index
    %1 = vector.load %arg2[%c0_1, %c0_2] : memref<256x128xbf16, #tpu.memory_space<vmem>>, vector<256x128xbf16>
    %c0_3 = arith.constant 0 : index
    %c0_4 = arith.constant 0 : index
    %2 = vector.load %arg3[%c0_3, %c0_4] : memref<1x128xf32, #tpu.memory_space<vmem>>, vector<1x128xf32>
    %c0_5 = arith.constant 0 : index
    %c0_6 = arith.constant 0 : index
    %3 = vector.load %arg4[%c0_5, %c0_6] : memref<128x128xbf16, #tpu.memory_space<vmem>>, vector<128x128xbf16>
    %c0_7 = arith.constant 0 : index
    %c0_8 = arith.constant 0 : index
    %4 = vector.load %arg5[%c0_7, %c0_8] : memref<1x128xf32, #tpu.memory_space<vmem>>, vector<1x128xf32>
    %c0_9 = arith.constant 0 : index
    %c0_10 = arith.constant 0 : index
    %5 = vector.load %arg6[%c0_9, %c0_10] : memref<128x256xbf16, #tpu.memory_space<vmem>>, vector<128x256xbf16>
    %c0_11 = arith.constant 0 : index
    %c0_12 = arith.constant 0 : index
    %6 = vector.load %arg7[%c0_11, %c0_12] : memref<1x256xf32, #tpu.memory_space<vmem>>, vector<1x256xf32>
    %cst = arith.constant dense<0.000000e+00> : vector<8x128xf32>
    %7 = tpu.matmul %0, %1, %cst {dimension_numbers = #tpu.dot_dimension_numbers<[1], [0], [0], [1], [0, 0, 1, 1], [], []>} : vector<8x256xbf16>, vector<256x128xbf16>, vector<8x128xf32> -> vector<8x128xf32>
    %8 = vector.broadcast %2 : vector<1x128xf32> to vector<8x128xf32>
    %9 = arith.addf %7, %8 : vector<8x128xf32>
    %cst_13 = arith.constant 0.000000e+00 : f32
    %10 = vector.broadcast %cst_13 : f32 to vector<8x128xf32>
    %11 = arith.maximumf %9, %10 : vector<8x128xf32>
    %12 = arith.extf %3 : vector<128x128xbf16> to vector<128x128xf32>
    %cst_14 = arith.constant dense<0.000000e+00> : vector<8x128xf32>
    %13 = tpu.matmul %11, %12, %cst_14 {dimension_numbers = #tpu.dot_dimension_numbers<[1], [0], [0], [1], [0, 0, 1, 1], [], []>} : vector<8x128xf32>, vector<128x128xf32>, vector<8x128xf32> -> vector<8x128xf32>
    %14 = vector.broadcast %4 : vector<1x128xf32> to vector<8x128xf32>
    %15 = arith.addf %13, %14 : vector<8x128xf32>
    %cst_15 = arith.constant 0.000000e+00 : f32
    %16 = vector.broadcast %cst_15 : f32 to vector<8x128xf32>
    %17 = arith.maximumf %15, %16 : vector<8x128xf32>
    %18 = arith.extf %5 : vector<128x256xbf16> to vector<128x256xf32>
    %cst_16 = arith.constant dense<0.000000e+00> : vector<8x256xf32>
    %19 = tpu.matmul %17, %18, %cst_16 {dimension_numbers = #tpu.dot_dimension_numbers<[1], [0], [0], [1], [0, 0, 1, 1], [], []>} : vector<8x128xf32>, vector<128x256xf32>, vector<8x256xf32> -> vector<8x256xf32>
    %20 = vector.broadcast %6 : vector<1x256xf32> to vector<8x256xf32>
    %21 = arith.addf %19, %20 : vector<8x256xf32>
    %22 = vector.extract_strided_slice %21 {offsets = [0, 0], sizes = [8, 128], strides = [1, 1]} : vector<8x256xf32> to vector<8x128xf32>
    %23 = vector.extract_strided_slice %21 {offsets = [0, 128], sizes = [8, 128], strides = [1, 1]} : vector<8x256xf32> to vector<8x128xf32>
    %c0_17 = arith.constant 0 : index
    %c0_18 = arith.constant 0 : index
    %24 = vector.load %arg8[%c0_17, %c0_18] : memref<8x256xf32, #tpu.memory_space<vmem>>, vector<8x128xf32>
    tpu.vector_store %arg8[%c0_17, %c0_18], %22 {strides = array<i32>} : memref<8x256xf32, #tpu.memory_space<vmem>>, vector<8x128xf32>,
    %25 = math.exp %23 : vector<8x128xf32>
    %c0_19 = arith.constant 0 : index
    %c128 = arith.constant 128 : index
    %26 = vector.load %arg8[%c0_19, %c128] : memref<8x256xf32, #tpu.memory_space<vmem>>, vector<8x128xf32>
    tpu.vector_store %arg8[%c0_19, %c128], %25 {strides = array<i32>} : memref<8x256xf32, #tpu.memory_space<vmem>>, vector<8x128xf32>,
    return
  }
  func.func @transform_0(%arg0: i32) -> (i32, i32) {
    %c0_i32 = arith.constant 0 : i32
    %c0_i32_0 = arith.constant 0 : i32
    return %arg0, %c0_i32 : i32, i32
  }
  func.func @transform_1(%arg0: i32) -> (i32, i32) {
    %c0_i32 = arith.constant 0 : i32
    %c0_i32_0 = arith.constant 0 : i32
    %c0_i32_1 = arith.constant 0 : i32
    return %c0_i32, %c0_i32_0 : i32, i32
  }
  func.func @transform_2(%arg0: i32) -> (i32, i32) {
    %c0_i32 = arith.constant 0 : i32
    %c0_i32_0 = arith.constant 0 : i32
    %c0_i32_1 = arith.constant 0 : i32
    return %c0_i32, %c0_i32_0 : i32, i32
  }
  func.func @transform_3(%arg0: i32) -> (i32, i32) {
    %c0_i32 = arith.constant 0 : i32
    %c0_i32_0 = arith.constant 0 : i32
    %c0_i32_1 = arith.constant 0 : i32
    return %c0_i32, %c0_i32_0 : i32, i32
  }
  func.func @transform_4(%arg0: i32) -> (i32, i32) {
    %c0_i32 = arith.constant 0 : i32
    %c0_i32_0 = arith.constant 0 : i32
    %c0_i32_1 = arith.constant 0 : i32
    return %c0_i32, %c0_i32_0 : i32, i32
  }
  func.func @transform_5(%arg0: i32) -> (i32, i32) {
    %c0_i32 = arith.constant 0 : i32
    %c0_i32_0 = arith.constant 0 : i32
    %c0_i32_1 = arith.constant 0 : i32
    return %c0_i32, %c0_i32_0 : i32, i32
  }
  func.func @transform_6(%arg0: i32) -> (i32, i32) {
    %c0_i32 = arith.constant 0 : i32
    %c0_i32_0 = arith.constant 0 : i32
    %c0_i32_1 = arith.constant 0 : i32
    return %c0_i32, %c0_i32_0 : i32, i32
  }
  func.func @transform_7(%arg0: i32) -> (i32, i32) {
    %c0_i32 = arith.constant 0 : i32
    %c0_i32_0 = arith.constant 0 : i32
    return %arg0, %c0_i32 : i32, i32
  }
}

</mosaic_0001>

<bundles_post_ra>
// kernel: _forward_impl.1
= control target key start
LH: loop header
LB: loop body
LE: loop exit
PB: predicated region body
PF: predicated region fallthrough
CT: control target
= control target key end

     0   :  { %12 = vsyncpa [#allocation3], 0  ;;  %s911_s0 = inlined_call_operand.vmem [shape: bf16[8,256], index: 0, kind: input, shape index: {}]   ;;  %s912_s1 = inlined_call_operand.hbm [shape: bf16[256,128], index: 1, kind: input, shape index: {}]   ;;  %s913_s2 = inlined_call_operand.vmem [shape: f32[1,128], index: 2, kind: input, shape index: {}]   ;;  %s914_s3 = inlined_call_operand.vmem [shape: bf16[128,128], index: 3, kind: input, shape index: {}]   ;;  %s915_s4 = inlined_call_operand.vmem [shape: f32[1,128], index: 4, kind: input, shape index: {}]   ;;  %s916_s5 = inlined_call_operand.hbm [shape: bf16[128,256], index: 5, kind: input, shape index: {}]   ;;  %s917_s6 = inlined_call_operand.vmem [shape: f32[1,256], index: 6, kind: input, shape index: {}]   ;;  %s918_s7 = inlined_call_operand.vmem [shape: f32[8,256], index: 7, kind: output, shape index: {}]  }
   0x1   :  { %13 = vsyncpa [#allocation5], 0  ;;  %s796_s24 = smov [#allocation2]   ;;  %s748_s28 = scalar_lea.hbm %s912_s1, 2048 }
   0x2   :  { %s21_s25 = sshll.u32 %s796_s24, 4  ;;  %p749_p0 = scmp.ne.s32.totalorder %s912_s1, %s748_s28  ;;  %s22_s25 = int_to_ptr.vmem [resolvable:$true] %s21_s25 }
   0x3   :  { %p752_p1 = scmp.lt.u32.totalorder %s748_s28, %s912_s1 }
   0x5   :  { %p754_p2 = pnand %p752_p1, %p749_p0 }
   0x7   :  { %757 = shalt.err (!%p754_p2)
}
   0x8   :  { %s758_s10 = scalar_lea.vmem %s22_s25, 2048  ;;  %p763_p4 = scmp.lt.s32.totalorder %s22_s25, %s22_s25 }
   0x9   :  { %p759_p3 = scmp.ne.s32.totalorder %s22_s25, %s758_s10  ;;  %p764_p5 = scmp.lt.s32.totalorder %s758_s10, %s758_s10 }
   0xb   :  { %p765_p6 = por %p764_p5, %p763_p4 }
   0xd   :  { %p766_p7 = pnand %p765_p6, %p759_p3 }
   0xf   :  { %769 = shalt.err (!%p766_p7)
}
  0x10   :  { %s797_s11 = smov 64   ;;  %s798_s12 = smov 4  }
  0x11   :  { %27 = dma.hbm_to_vmem [thread:$0]  %s912_s1, 2048, %s22_s25, [#allocation3], %s797_s11, %s797_s11, %s798_s12  }
  0x12   :  { %s799_s15 = smov [#allocation4]   ;;  %s770_s19 = scalar_lea.hbm %s916_s5, 2048 }
  0x13   :  { %s39_s16 = sshll.u32 %s799_s15, 4  ;;  %p771_p8 = scmp.ne.s32.totalorder %s916_s5, %s770_s19  ;;  %s40_s16 = int_to_ptr.vmem [resolvable:$true] %s39_s16 }
  0x14   :  { %p774_p9 = scmp.lt.u32.totalorder %s770_s19, %s916_s5 }
  0x16   :  { %p776_p10 = pnand %p774_p9, %p771_p8 }
  0x18   :  { %779 = shalt.err (!%p776_p10)
}
  0x19   :  { %s780_s24 = scalar_lea.vmem %s40_s16, 2048  ;;  %p785_p12 = scmp.lt.s32.totalorder %s40_s16, %s40_s16 }
  0x1a   :  { %p781_p11 = scmp.ne.s32.totalorder %s40_s16, %s780_s24  ;;  %p786_p13 = scmp.lt.s32.totalorder %s780_s24, %s780_s24 }
  0x1c   :  { %p787_p0 = por %p786_p13, %p785_p12 }
  0x1e   :  { %p788_p1 = pnand %p787_p0, %p781_p11 }
  0x20   :  { %791 = shalt.err (!%p788_p1)
}
  0x21   :  { %s800_s1 = smov 128   ;;  %s801_s25 = smov 8  }
  0x22   :  { %45 = dma.hbm_to_vmem [thread:$0]  %s916_s5, 2048, %s40_s16, [#allocation5], %s800_s1, %s800_s1, %s801_s25  }
  0x23   :  { %792 = dma.done.wait [#allocation3], 2048  }
  0x24   :  { %793 = vsyncadd [#allocation3], 4294965248 }
  0x25   :  { %794 = dma.done.wait [#allocation5], 2048  }
  0x26   :  { %795 = vsyncadd [#allocation5], 4294965248  ;;  %v802_v0 = vmov 0.0|0.0   ;;  %v704_v1 = vld [vmem:[#allocation2 + $0x40] sm:$0xff]   ;;  %v706_v3 = vld [vmem:[#allocation2 + $0x48] sm:$0xff]   ;;  %vm803_vm0 = vmmov 0   ;;  %v399_v58 = vlaneseq }
  0x27   :  { %623 = vmatprep.subr.bf16.mxu1 %v802_v0  ;;  %v705_v2 = vld [vmem:[#allocation2] sm:$0xff]   ;;  %549 = vmatprep.subr.bf16.mxu0 %v704_v1  ;;  %v707_v4 = vld [vmem:[#allocation2 + $0x8] sm:$0xff]   ;;  %v708_v5 = vld [vmem:[#allocation2 + $0x50] sm:$0xff]   ;;  %v804_v28 = vmov 0.0  }
  0x28   :  { %550 = vmatpush3.bf16.msra.mxu0 %v705_v2  ;;  %v709_v6 = vld [vmem:[#allocation2 + $0x10] sm:$0xff]   ;;  %v710_v7 = vld [vmem:[#allocation2 + $0x58] sm:$0xff]   ;;  %v712_v9 = vld [vmem:[#allocation2 + $0x60] sm:$0xff]   ;;  %620 = vmatprep.mubr.msk.f32.mxu1 %vm803_vm0, %v804_v28  ;;  %v400_v59 = vshrl.u32 %v399_v58, 7 }
  0x29   :  { %551 = vmatprep.subr.bf16.mxu0 %v706_v3  ;;  %v711_v8 = vld [vmem:[#allocation2 + $0x18] sm:$0xff]   ;;  %v713_v10 = vld [vmem:[#allocation2 + $0x20] sm:$0xff]   ;;  %v714_v11 = vld [vmem:[#allocation2 + $0x68] sm:$0xff]  }
  0x2a   :  { %v55_v12 = vld [vmem:[%s911_s0] sm:$0xff]  ;;  %v715_v14 = vld [vmem:[#allocation2 + $0x28] sm:$0xff]   ;;  %v716_v16 = vld [vmem:[#allocation2 + $0x70] sm:$0xff]   ;;  %v401_v60 = vsub.s32 0, %v400_v59  ;;  %v405_v62 = vsub.s32 1, %v400_v59 }
  0x2b   :  { %v511_v13 = vld [vmem:[%s914_s3] sm:$0xff]   ;;  %v492_v15 = vcombine.high %v55_v12, %v55_v12  ;;  %v542_v17 = vld [vmem:[%s914_s3 + $0x8] sm:$0xff]   ;;  %v543_v18 = vld [vmem:[%s914_s3 + $0x10] sm:$0xff]   ;;  %v491_v23 = vcombine.low %v55_v12, %v55_v12 }
  0x2c   :  { %552 = vmatpush3.bf16.msra.mxu0 %v707_v4  ;;  %625 = vmatpush3.bf16.msra.mxu1 %v511_v13  ;;  %v717_v19 = vld [vmem:[#allocation2 + $0x30] sm:$0xff]   ;;  %v718_v20 = vld [vmem:[#allocation2 + $0x78] sm:$0xff]   ;;  %v545_v24 = vld [vmem:[%s914_s3 + $0x20] sm:$0xff]  }
  0x2d   :  { %553 = vmatprep.subr.bf16.mxu0 %v708_v5  ;;  %626 = vmatprep.subr.bf16.mxu1 %v802_v0  ;;  %v544_v21 = vld [vmem:[%s914_s3 + $0x18] sm:$0xff]   ;;  %v546_v25 = vld [vmem:[%s914_s3 + $0x28] sm:$0xff]   ;;  %v547_v26 = vld [vmem:[%s914_s3 + $0x30] sm:$0xff]  }
  0x2e   :  { %264 = vmatprep.mubr.bf16.mxu0 %v492_v15  ;;  %v719_v22 = vld [vmem:[#allocation2 + $0x38] sm:$0xff]   ;;  %v722_v29 = vld [vmem:[#allocation4 + $0x4] ss:$8 sps:$4 sm:$0xff]   ;;  %v724_v30 = vld [vmem:[#allocation4] ss:$8 sps:$4 sm:$0xff]  }
  0x2f   :  { %v548_v27 = vld [vmem:[%s914_s3 + $0x38] sm:$0xff]   ;;  %v728_v33 = vld [vmem:[#allocation4 + $0x24] ss:$8 sps:$4 sm:$0xff]   ;;  %v730_v34 = vld [vmem:[#allocation4 + $0x20] ss:$8 sps:$4 sm:$0xff]  }
  0x30   :  { %554 = vmatpush3.bf16.msra.mxu0 %v709_v6  ;;  %628 = vmatpush3.bf16.msra.mxu1 %v542_v17  ;;  %v725_v31 = vld [vmem:[#allocation4 + $0x14] ss:$8 sps:$4 sm:$0xff]   ;;  %v727_v32 = vld [vmem:[#allocation4 + $0x10] ss:$8 sps:$4 sm:$0xff]   ;;  %v734_v37 = vld [vmem:[#allocation4 + $0x44] ss:$8 sps:$4 sm:$0xff]  }
  0x31   :  { %555 = vmatprep.subr.bf16.mxu0 %v710_v7  ;;  %629 = vmatprep.subr.bf16.mxu1 %v802_v0  ;;  %v731_v35 = vld [vmem:[#allocation4 + $0x34] ss:$8 sps:$4 sm:$0xff]   ;;  %v733_v36 = vld [vmem:[#allocation4 + $0x30] ss:$8 sps:$4 sm:$0xff]   ;;  %v736_v38 = vld [vmem:[#allocation4 + $0x40] ss:$8 sps:$4 sm:$0xff]  }
  0x32   :  { %v737_v39 = vld [vmem:[#allocation4 + $0x54] ss:$8 sps:$4 sm:$0xff]   ;;  %v739_v40 = vld [vmem:[#allocation4 + $0x50] ss:$8 sps:$4 sm:$0xff]   ;;  %v740_v41 = vld [vmem:[#allocation4 + $0x64] ss:$8 sps:$4 sm:$0xff]  }
  0x33   :  { %v742_v42 = vld [vmem:[#allocation4 + $0x60] ss:$8 sps:$4 sm:$0xff]   ;;  %v743_v51 = vld [vmem:[#allocation4 + $0x74] ss:$8 sps:$4 sm:$0xff]   ;;  %v745_v52 = vld [vmem:[#allocation4 + $0x70] ss:$8 sps:$4 sm:$0xff]  }
  0x34   :  { %556 = vmatpush3.bf16.msra.mxu0 %v711_v8  ;;  %631 = vmatpush3.bf16.msra.mxu1 %v543_v18  ;;  %v490_v44 = vld [vmem:[%s913_s2] ss:$0 sm:$0xff] }
  0x35   :  { %557 = vmatprep.subr.bf16.mxu0 %v712_v9  ;;  %632 = vmatprep.subr.bf16.mxu1 %v802_v0  ;;  %v509_v53 = vld [vmem:[%s915_s4] ss:$0 sm:$0xff] }
  0x36   :  { %v122_v61 = vld [vmem:[%s917_s6] sm:$0x3] }
  0x37   :  { %v402_v63 = vrot.slane %v122_v61, %v401_v60 }
  0x38   :  { %558 = vmatpush3.bf16.msra.mxu0 %v713_v10  ;;  %634 = vmatpush3.bf16.msra.mxu1 %v544_v21 }
  0x39   :  { %559 = vmatprep.subr.bf16.mxu0 %v714_v11  ;;  %635 = vmatprep.subr.bf16.mxu1 %v802_v0 }
  0x3c   :  { %560 = vmatpush3.bf16.msra.mxu0 %v715_v14  ;;  %637 = vmatpush3.bf16.msra.mxu1 %v545_v24 }
  0x3d   :  { %561 = vmatprep.subr.bf16.mxu0 %v716_v16  ;;  %638 = vmatprep.subr.bf16.mxu1 %v802_v0 }
  0x40   :  { %562 = vmatpush3.bf16.msra.mxu0 %v717_v19  ;;  %640 = vmatpush3.bf16.msra.mxu1 %v546_v25 }
  0x41   :  { %563 = vmatprep.subr.bf16.mxu0 %v718_v20  ;;  %641 = vmatprep.subr.bf16.mxu1 %v802_v0 }
  0x44   :  { %564 = vmatpush3.bf16.msra.mxu0 %v719_v22  ;;  %643 = vmatpush3.bf16.msra.mxu1 %v547_v26 }
  0x45   :  { %644 = vmatprep.subr.bf16.mxu1 %v802_v0  ;;  %648 = vmatprep.subr.bf16.mxu0 %v722_v29  ;;  %v406_v0 = vrot.slane %v122_v61, %v405_v62 }
  0x47   :  { %265 = vmatmul.mubr.bf16.vlgmr.msra.gmra.mrb[0].mxu0 %v491_v23 }
  0x48   :  { %646 = vmatpush3.bf16.msra.mxu1 %v548_v27  ;;  %473 = vmatprep.mubr.f32.mxu0 %v804_v28 }
  0x49   :  { %650 = vmatpush1.bf16.msra.mxu0 %v724_v30 }
  0x4a   :  { %652 = vmatprep.subr.bf16.mxu0 %v725_v31 }
  0x4d   :  { %654 = vmatpush1.bf16.msra.mxu0 %v727_v32 }
  0x4e   :  { %656 = vmatprep.subr.bf16.mxu0 %v728_v33 }
  0x51   :  { %658 = vmatpush1.bf16.msra.mxu0 %v730_v34 }
  0x52   :  { %660 = vmatprep.subr.bf16.mxu0 %v731_v35 }
  0x55   :  { %662 = vmatpush1.bf16.msra.mxu0 %v733_v36 }
  0x56   :  { %664 = vmatprep.subr.bf16.mxu0 %v734_v37 }
  0x59   :  { %666 = vmatpush1.bf16.msra.mxu0 %v736_v38 }
  0x5a   :  { %668 = vmatprep.subr.bf16.mxu0 %v737_v39 }
  0x5d   :  { %670 = vmatpush1.bf16.msra.mxu0 %v739_v40 }
  0x5e   :  { %672 = vmatprep.subr.bf16.mxu0 %v740_v41 }
  0x61   :  { %674 = vmatpush1.bf16.msra.mxu0 %v742_v42 }
  0x62   :  { %676 = vmatprep.subr.bf16.mxu0 %v743_v51 }
  0x65   :  { %678 = vmatpush1.bf16.msra.mxu0 %v745_v52 }
 0x11a   :  { %v565_v43 = vpop.f32.mrb[0].mxu0 }
 0x11b   :  { %v566_v45 = vpop.f32.mrb[1].mxu0 }
 0x11c   :  { %v567_v46 = vadd.f32 %v566_v45, %v565_v43  ;;  %v568_v47 = vpop.f32.mrb[2].mxu0 }
 0x11d   :  { %v569_v48 = vpop.f32.mrb[3].mxu0 }
 0x11e   :  { %v267_v49 = vadd.f32 %v567_v46, %v490_v44 }
 0x120   :  { %v272_v50 = vmax.f32 %v267_v49, 0.0 }
 0x122   :  { %621 = vmatmul.mubr.f32.vlgmr.msra.gmra.mrb[0].mxu1 %v272_v50 }
 0x1f5   :  { %v361_v54 = vpop.f32.mrb[0].mxu1 }
 0x1f6   :  { %v362_v55 = vadd.f32 %v509_v53, %v361_v54  ;;  %v622_v56 = vpop.f32.mrb[1].mxu1 }
 0x1f8   :  { %v365_v57 = vmax.f32 %v362_v55, 0.0 }
 0x1fa   :  { %474 = vmatmul.mubr.f32.vlgmr.msra.gmra.mrb[4].mxu0 %v365_v57 }
 0x2cd   :  { %v475_v1 = vpop.f32.mrb[4].mxu0 }
 0x2ce   :  { %v476_v2 = vadd.f32 %v475_v1, %v402_v63  ;;  %v477_v3 = vpop.f32.mrb[5].mxu0 }
 0x2cf   :  { %v478_v4 = vadd.f32 %v477_v3, %v406_v0 }
 0x2d0   :  { %480 = vst [vmem:[%s918_s7] sm:$0xff] %v476_v2 }
 0x2d1   :  { %v481_v5 = vmul.f32 1.442695, %v478_v4 }
 0x2d3   :  { %746 = vpow2.f32 %v481_v5 }
 0x2dd   :  { %v747_v6 = vpop.eup %746 }
 0x2de   :  { %483 = vst [vmem:[%s918_s7 + $0x8] sm:$0xff] %v747_v6 }
 0x2df   :  { %488 = vsyncpa [#allocation3], 1 }
 0x2e0   :  { %489 = vsyncpa [#allocation5], 1 }

</bundles_post_ra>
